<compile_context>
chip_gen: v7x
topology: tpu7x:2x2x1
jax: 0.10.0
libtpu: 0.0.40
codegen_flags: <defaults>
</compile_context>

<pallas_src>
import jax
import jax.numpy as jnp
from jax.experimental import pallas as pl
from jax.experimental.pallas import tpu as pltpu


def _logreg_kernel(x_ref, w_ref, b_ref, o_ref):
    # x_ref: [2, TR, 128] (VMEM), w_ref: [2] = weight/2 (SMEM),
    # b_ref: [1] = bias/2 (SMEM), o_ref: [TR, 128] (VMEM).
    x0 = x_ref[0]                                   # (TR, 128)
    x1 = x_ref[1]                                   # (TR, 128)
    # Linear(2, 1) with the 0.5 sigmoid pre-scale folded into w/b: zh = z/2.
    zh = x0 * w_ref[0] + x1 * w_ref[1] + b_ref[0]   # (TR, 128) f32 (VPU FMAs)
    # sigmoid(z) = 0.5 * (tanh(z/2) + 1)  -- single EUP transcendental.
    o_ref[...] = (jnp.tanh(zh) * 0.5 + 0.5).astype(o_ref.dtype)


def _choose_tile_rows(r_needed, requested):
    """Pick a sublane tile (multiple of 8 rows of 128 lanes).

    Keeps >=4 grid steps when there is enough data so the parallel axis can
    shard across v7x's two TensorCores and each core still double-buffers.
    """
    requested = max(8, (requested // 8) * 8)
    cap4 = -(-r_needed // 4)                 # ceil(r_needed / 4)
    cap4 = max(8, -(-cap4 // 8) * 8)         # round up to a multiple of 8
    tile = min(requested, cap4)
    tile = min(tile, max(8, -(-r_needed // 8) * 8))
    return max(tile, 8)


def logistic_regression(x, weight, bias, *, tile_rows=2048):
    """x: [N, 2] f32, weight: [1, 2] f32 (PyTorch layout), bias: [1] f32."""
    n, f_in = x.shape
    f_out, f_in_w = weight.shape
    assert f_in == 2 and f_in_w == 2 and f_out == 1

    # Dense batch layout: pack the batch onto sublanes *and* lanes.
    r_needed = pl.cdiv(n, 128)                        # rows of 128 batch elems
    tile_rows = _choose_tile_rows(r_needed, tile_rows)
    r_pad = pl.cdiv(r_needed, tile_rows) * tile_rows
    n_pad = r_pad * 128

    # One wrapper-side pass: pad + transpose + reshape to [2, R, 128].
    # (For production, store x feature-major upstream and skip this pass.)
    x_pad = jnp.pad(x, ((0, n_pad - n), (0, 0)))      # [N_pad, 2]
    xt = x_pad.T.reshape(2, r_pad, 128)               # [2, R, 128]

    # Fold the 0.5 sigmoid pre-scale into the parameters; keep f32 in SMEM.
    w_half = (weight.astype(jnp.float32) * 0.5).reshape(f_in)   # [2]
    b_half = (bias.astype(jnp.float32) * 0.5).reshape(f_out)    # [1]

    grid = (r_pad // tile_rows,)

    out_dense = pl.pallas_call(
        _logreg_kernel,
        out_shape=jax.ShapeDtypeStruct((r_pad, 128), jnp.float32),
        grid_spec=pltpu.PrefetchScalarGridSpec(
            num_scalar_prefetch=0,
            grid=grid,
            in_specs=[
                pl.BlockSpec((2, tile_rows, 128), lambda i: (0, i, 0)),
                pl.BlockSpec(memory_space=pltpu.MemorySpace.SMEM),
                pl.BlockSpec(memory_space=pltpu.MemorySpace.SMEM),
            ],
            out_specs=pl.BlockSpec((tile_rows, 128), lambda i: (i, 0)),
        ),
        compiler_params=pltpu.CompilerParams(
            dimension_semantics=("parallel",),
            # Explicit budget: ~6 MiB double-buffered tiles + temporaries fit
            # comfortably; 32 MiB is safe on v5e/v6e (128 MiB) and v7x (64 MiB/TC).
            vmem_limit_bytes=32 * 1024 * 1024,
        ),
        cost_estimate=pl.CostEstimate(
            flops=5 * n_pad,
            transcendentals=n_pad,
            bytes_accessed=(f_in + f_out) * n_pad * 4,
        ),
    )(xt, w_half, b_half)

    # Back to PyTorch's [N, 1] output layout (cheap wrapper-side reshape).
    return out_dense.reshape(n_pad)[:n].reshape(n, f_out)


if __name__ == "__main__":
    key = jax.random.PRNGKey(0)
    kx, kw, kb = jax.random.split(key, 3)

    # Small input consistent with Linear(2, 1): batch=8, features=2.
    N, F_IN, F_OUT = 8, 2, 1
    x = jax.random.normal(kx, (N, F_IN), dtype=jnp.float32)

    # Deterministic parameter init mimicking nn.Linear: U(-1/sqrt(fan_in), +)
    bound = 1.0 / jnp.sqrt(jnp.float32(F_IN))
    weight = jax.random.uniform(kw, (F_OUT, F_IN), jnp.float32, -bound, bound)
    bias = jax.random.uniform(kb, (F_OUT,), jnp.float32, -bound, bound)

    out = logistic_regression(x, weight, bias)
    out = jax.block_until_ready(out)

    # Reference check in plain JAX.
    ref = jax.nn.sigmoid(x @ weight.T + bias)
    assert out.shape == (N, F_OUT)
    assert jnp.allclose(out, ref, atol=1e-5, rtol=1e-5)

    print("KERNEL_OK")
</pallas_src>

<mosaic_0001>
module attributes {stable_mosaic.version = 11 : i64} {
  func.func @_logreg_kernel(%arg0: i32, %arg1: memref<2x8x128xf32, #tpu.memory_space<vmem>>, %arg2: memref<2xf32, #tpu.memory_space<smem>>, %arg3: memref<1xf32, #tpu.memory_space<smem>>, %arg4: memref<8x128xf32, #tpu.memory_space<vmem>>) attributes {dimension_semantics = [#tpu.dimension_semantics<parallel>], iteration_bounds = array<i64: 1>, scalar_prefetch = 0 : i64, scratch_operands = 0 : i64, tpu.core_type = #tpu.core_type<tc>, window_params = [{transform_indices = @transform_0, window_bounds = array<i64: 2, 8, 128>}, {transform_indices = @transform_1, window_bounds = array<i64: 2>}, {transform_indices = @transform_2, window_bounds = array<i64: 1>}, {transform_indices = @transform_3, window_bounds = array<i64: 8, 128>}]} {
    %c0 = arith.constant 0 : index
    %c0_0 = arith.constant 0 : index
    %c0_1 = arith.constant 0 : index
    %0 = vector.load %arg1[%c0, %c0_0, %c0_1] : memref<2x8x128xf32, #tpu.memory_space<vmem>>, vector<1x8x128xf32>
    %1 = vector.shape_cast %0 : vector<1x8x128xf32> to vector<8x128xf32>
    %c1 = arith.constant 1 : index
    %c0_2 = arith.constant 0 : index
    %c0_3 = arith.constant 0 : index
    %2 = vector.load %arg1[%c1, %c0_2, %c0_3] : memref<2x8x128xf32, #tpu.memory_space<vmem>>, vector<1x8x128xf32>
    %3 = vector.shape_cast %2 : vector<1x8x128xf32> to vector<8x128xf32>
    %c0_4 = arith.constant 0 : index
    %4 = memref.load %arg2[%c0_4] : memref<2xf32, #tpu.memory_space<smem>>
    %5 = vector.broadcast %4 : f32 to vector<8x128xf32>
    %6 = arith.mulf %1, %5 : vector<8x128xf32>
    %c1_5 = arith.constant 1 : index
    %7 = memref.load %arg2[%c1_5] : memref<2xf32, #tpu.memory_space<smem>>
    %8 = vector.broadcast %7 : f32 to vector<8x128xf32>
    %9 = arith.mulf %3, %8 : vector<8x128xf32>
    %10 = arith.addf %6, %9 : vector<8x128xf32>
    %c0_6 = arith.constant 0 : index
    %11 = memref.load %arg3[%c0_6] : memref<1xf32, #tpu.memory_space<smem>>
    %12 = vector.broadcast %11 : f32 to vector<8x128xf32>
    %13 = arith.addf %10, %12 : vector<8x128xf32>
    %14 = math.tanh %13 : vector<8x128xf32>
    %cst = arith.constant 5.000000e-01 : f32
    %15 = vector.broadcast %cst : f32 to vector<8x128xf32>
    %16 = arith.mulf %14, %15 : vector<8x128xf32>
    %cst_7 = arith.constant 5.000000e-01 : f32
    %17 = vector.broadcast %cst_7 : f32 to vector<8x128xf32>
    %18 = arith.addf %16, %17 : vector<8x128xf32>
    %c0_8 = arith.constant 0 : index
    %c0_9 = arith.constant 0 : index
    %19 = vector.load %arg4[%c0_8, %c0_9] : memref<8x128xf32, #tpu.memory_space<vmem>>, vector<8x128xf32>
    tpu.vector_store %arg4[%c0_8, %c0_9], %18 {strides = array<i32>} : memref<8x128xf32, #tpu.memory_space<vmem>>, vector<8x128xf32>,
    return
  }
  func.func @transform_0(%arg0: i32) -> (i32, i32, i32) {
    %c0_i32 = arith.constant 0 : i32
    %c0_i32_0 = arith.constant 0 : i32
    %c0_i32_1 = arith.constant 0 : i32
    return %c0_i32, %arg0, %c0_i32_0 : i32, i32, i32
  }
  func.func @transform_1(%arg0: i32) -> i32 {
    %c0_i32 = arith.constant 0 : i32
    %c0_i32_0 = arith.constant 0 : i32
    return %c0_i32 : i32
  }
  func.func @transform_2(%arg0: i32) -> i32 {
    %c0_i32 = arith.constant 0 : i32
    %c0_i32_0 = arith.constant 0 : i32
    return %c0_i32 : i32
  }
  func.func @transform_3(%arg0: i32) -> (i32, i32) {
    %c0_i32 = arith.constant 0 : i32
    %c0_i32_0 = arith.constant 0 : i32
    return %arg0, %c0_i32 : i32, i32
  }
}

</mosaic_0001>

<bundles_post_ra>
// kernel: tpu_custom_call.1
= control target key start
LH: loop header
LB: loop body
LE: loop exit
PB: predicated region body
PF: predicated region fallthrough
CT: control target
= control target key end

     0   :  { %9 = vsyncpa [#allocation4], 0  ;;  %s201_s0 = inlined_call_operand.hbm [shape: f32[2,8,128], index: 0, kind: input, shape index: {}]   ;;  %s202_s1 = inlined_call_operand.vmem [shape: f32[2], index: 1, kind: input, shape index: {}]   ;;  %s203_s2 = inlined_call_operand.<no memory space> [shape: f32[1], index: 2, kind: input, shape index: {}]   ;;  %s204_s3 = inlined_call_operand.hbm [shape: f32[8,128], index: 3, kind: output, shape index: {}]  }
   0x1   :  { %10 = vsyncpa [#allocation6], 0 }
   0x2   :  { %11 = vsyncpa [#allocation5], 0  ;;  %s146_s12 = smov [#allocation3]   ;;  %s30_s16 = sshll.u32 %s202_s1, 4  ;;  %s31_s16 = int_to_ptr.vmem [resolvable:$true] %s30_s16 }
   0x3   :  { %s17_s13 = sshll.u32 %s146_s12, 4  ;;  %s84_s19 = scalar_lea.hbm %s201_s0, 256  ;;  %s18_s13 = int_to_ptr.vmem [resolvable:$true] %s17_s13 }
   0x4   :  { %p85_p0 = scmp.ne.s32.totalorder %s201_s0, %s84_s19  ;;  %p88_p1 = scmp.lt.u32.totalorder %s84_s19, %s201_s0 }
   0x6   :  { %p90_p2 = pnand %p88_p1, %p85_p0 }
   0x8   :  { %93 = shalt.err (!%p90_p2)
}
   0x9   :  { %s94_s24 = scalar_lea.vmem %s18_s13, 256  ;;  %p99_p4 = scmp.lt.s32.totalorder %s18_s13, %s18_s13 }
   0xa   :  { %p95_p3 = scmp.ne.s32.totalorder %s18_s13, %s94_s24  ;;  %p100_p5 = scmp.lt.s32.totalorder %s94_s24, %s94_s24 }
   0xc   :  { %p101_p6 = por %p100_p5, %p99_p4 }
   0xe   :  { %p102_p7 = pnand %p101_p6, %p95_p3 }
  0x10   :  { %105 = shalt.err (!%p102_p7)
}
  0x11   :  { %s147_s1 = smov 128   ;;  %s148_s25 = smov 8  }
  0x12   :  { %23 = dma.hbm_to_vmem [thread:$0]  %s201_s0, 256, %s18_s13, [#allocation4], %s147_s1, %s147_s1, %s148_s25  }
  0x13   :  { %s106_s28 = scalar_lea.vmem %s31_s16, 16  ;;  %p111_p9 = scmp.lt.s32.totalorder %s31_s16, %s31_s16 }
  0x14   :  { %p107_p8 = scmp.ne.s32.totalorder %s31_s16, %s106_s28  ;;  %p112_p10 = scmp.lt.s32.totalorder %s106_s28, %s106_s28 }
  0x16   :  { %p113_p11 = por %p112_p10, %p111_p9 }
  0x18   :  { %p114_p12 = pnand %p113_p11, %p107_p8 }
  0x1a   :  { %117 = shalt.err (!%p114_p12)
}
  0x1b   :  { %s149_s29 = smov [#allocation7]  }
  0x1c   :  { %33 = dma.vmem_to_smem %s31_s16, 16, %s149_s29, [#allocation6]  }
  0x1d   :  { %140 = dma.done.wait [#allocation4], 256  }
  0x1e   :  { %141 = vsyncadd [#allocation4], 4294967040 }
  0x1f   :  { %142 = dma.done.wait [#allocation6], 16  }
  0x20   :  { %143 = vsyncadd [#allocation6], 4294967280 }
  0x21   :  { %42 = sfence }
  0x22   :  { %s46_s30 = sld [smem:[#allocation7]]  ;;  %s76_s4 = sld [smem:[#allocation7 + $0x1]]  ;;  %v43_v0 = vld [vmem:[#allocation3] sm:$0xff]  ;;  %v45_v1 = vld [vmem:[#allocation3 + $0x8] sm:$0xff]  ;;  %v54_v6 = vstv %s203_s2 }
  0x23   :  { %s150_s6 = smov [#allocation8]  }
  0x24   :  { %s66_s7 = sshll.u32 %s150_s6, 4  ;;  %s67_s7 = int_to_ptr.vmem [resolvable:$true] %s66_s7 }
  0x25   :  { %s118_s8 = scalar_lea.vmem %s67_s7, 128  ;;  %p123_p0 = scmp.lt.s32.totalorder %s67_s7, %s67_s7 }
  0x26   :  { %p119_p13 = scmp.ne.s32.totalorder %s67_s7, %s118_s8  ;;  %p124_p1 = scmp.lt.s32.totalorder %s118_s8, %s118_s8 }
  0x28   :  { %v47_v2 = vstv %s46_s30  ;;  %v50_v3 = vstv %s76_s4  ;;  %p125_p2 = por %p124_p1, %p123_p0 }
  0x29   :  { %v48_v4 = vmul.f32 %v47_v2, %v43_v0  ;;  %v51_v5 = vmul.f32 %v50_v3, %v45_v1 }
  0x2a   :  { %p126_p3 = pnand %p125_p2, %p119_p13 }
  0x2b   :  { %v52_v7 = vadd.f32 %v51_v5, %v48_v4 }
  0x2d   :  { %v55_v8 = vadd.f32 %v54_v6, %v52_v7 }
  0x2f   :  { %82 = vtanh.f32 %v55_v8 }
  0x39   :  { %v83_v9 = vpop.eup %82 }
  0x3a   :  { %v57_v10 = vmul.f32 0.5, %v83_v9 }
  0x3c   :  { %v58_v11 = vadd.f32 0.5, %v57_v10 }
  0x3e   :  { %59 = vst [vmem:[#allocation8] sm:$0xff] %v58_v11 }
  0x3f   :  { %129 = shalt.err (!%p126_p3)
}
  0x40   :  { %s130_s2 = scalar_lea.hbm %s204_s3, 128 }
  0x41   :  { %p131_p4 = scmp.ne.s32.totalorder %s204_s3, %s130_s2  ;;  %p134_p5 = scmp.lt.u32.totalorder %s130_s2, %s204_s3 }
  0x43   :  { %p136_p6 = pnand %p134_p5, %p131_p4 }
  0x45   :  { %139 = shalt.err (!%p136_p6)
}
  0x46   :  { %69 = dma.vmem_to_hbm [thread:$0]  %s67_s7, 128, %s204_s3, [#allocation5]  }
  0x47   :  { %144 = dma.done.wait [#allocation5], 128  }
  0x48   :  { %145 = vsyncadd [#allocation5], 4294967168 }
  0x49   :  { %73 = vsyncpa [#allocation4], 1 }
  0x4a   :  { %74 = vsyncpa [#allocation5], 1 }
  0x4b   :  { %75 = vsyncpa [#allocation6], 1 }

</bundles_post_ra>
